<compile_context>
chip_gen: v7x
topology: tpu7x:2x2x1
jax: 0.10.0
libtpu: 0.0.40
codegen_flags: <defaults>
</compile_context>

<pallas_src>
import functools

import jax
import jax.numpy as jnp
from jax.experimental import pallas as pl
from jax.experimental.pallas import tpu as pltpu


def _round_up(x, m):
    return (x + m - 1) // m * m


def _ppo_fused_kernel(
    x_ref,      # (TILE_B, D_in) observation tile
    p_ref,      # (P_rows, LANE) packed parameters (resident across grid steps)
    o_ref,      # (TILE_B, OUT_W) fused [logits | value | 0-pad] output tile
    *,
    d_in, h, fw, hw, out_w, n_actions,
    r_w1, r_w2, r_wh1, r_wh2, r_b,
):
    x = x_ref[...]

    # ---- feature_net.0 : Linear(D_in, 2H) + ReLU ----
    w1 = p_ref[r_w1:r_w1 + d_in, 0:fw]
    b1 = p_ref[r_b:r_b + 1, 0:fw]
    h1 = jnp.maximum(
        jnp.dot(x, w1, preferred_element_type=jnp.float32) + b1, 0.0)

    # ---- feature_net.2 : Linear(2H, H) + ReLU ----
    w2 = p_ref[r_w2:r_w2 + fw, 0:h]
    b2 = p_ref[r_b + 8:r_b + 9, 0:h]
    feat = jnp.maximum(
        jnp.dot(h1, w2, preferred_element_type=jnp.float32) + b2, 0.0)

    # ---- fused actor.0 | critic.0 : one (H, 2H) matmul + ReLU ----
    wh1 = p_ref[r_wh1:r_wh1 + h, 0:hw]        # [wa1 | wc1]
    bh1 = p_ref[r_b + 16:r_b + 17, 0:hw]      # [ba1 | bc1]
    head1 = jnp.maximum(
        jnp.dot(feat, wh1, preferred_element_type=jnp.float32) + bh1, 0.0)

    # ---- fused actor.2 | critic.2 : block-diagonal (2H, OUT_W) matmul ----
    #   wh2 = [[wa2, 0], [0, wc2]]  so  head1 @ wh2 = [a1@wa2 | c1@wc2]
    wh2 = p_ref[r_wh2:r_wh2 + hw, 0:out_w]
    bh2 = p_ref[r_b + 24:r_b + 25, 0:out_w]   # [ba2 | bc2 | 0-pad]
    o_ref[...] = (
        jnp.dot(head1, wh2, preferred_element_type=jnp.float32) + bh2)


def init_params(key, input_dim, hidden_dim, n_actions):
    """Deterministic synthetic parameters (nn.Linear shapes, stored as (in, out))."""
    ks = jax.random.split(key, 12)

    def lin(kw, kb, din, dout):
        bound = 1.0 / jnp.sqrt(jnp.float32(din))
        w = jax.random.uniform(kw, (din, dout), jnp.float32, -bound, bound)
        b = jax.random.uniform(kb, (1, dout), jnp.float32, -bound, bound)
        return w, b

    p = {}
    p["w1"], p["b1"] = lin(ks[0], ks[1], input_dim, hidden_dim * 2)   # feature_net.0
    p["w2"], p["b2"] = lin(ks[2], ks[3], hidden_dim * 2, hidden_dim)  # feature_net.2
    p["wa1"], p["ba1"] = lin(ks[4], ks[5], hidden_dim, hidden_dim)    # actor.0
    p["wa2"], p["ba2"] = lin(ks[6], ks[7], hidden_dim, n_actions)     # actor.2
    p["wc1"], p["bc1"] = lin(ks[8], ks[9], hidden_dim, hidden_dim)    # critic.0
    p["wc2"], p["bc2"] = lin(ks[10], ks[11], hidden_dim, 1)           # critic.2
    return p


@jax.jit
def ppo_policy_forward(real_obs, action_mask, params):
    """Equivalent of PPOPolicy.forward: returns (action_logits, action_mask, state_value)."""
    # ---- static dims (all derived from parameter shapes at trace time) ----
    d_in, fw = params["w1"].shape                 # fw = 2 * hidden_dim
    h = params["w2"].shape[1]                     # hidden_dim
    n_actions = params["wa2"].shape[1]
    hw = 2 * h                                    # fused head width [actor | critic]
    av = n_actions + 1                            # logits + value
    out_w = _round_up(av, 128)                    # lane-dense output width
    lane = max(128, _round_up(fw, 128), _round_up(hw, 128), out_w)

    d_in_pad = _round_up(d_in, 8)
    fw_pad = _round_up(fw, 8)
    h_pad = _round_up(h, 8)
    hw_pad = _round_up(hw, 8)

    r_w1 = 0
    r_w2 = r_w1 + d_in_pad
    r_wh1 = r_w2 + fw_pad
    r_wh2 = r_wh1 + h_pad
    r_b = r_wh2 + hw_pad                          # 4 bias rows at r_b + {0,8,16,24}
    p_rows = r_b + 32

    # ---- pack all weights / biases into one lane-padded VMEM operand ----
    pbuf = jnp.zeros((p_rows, lane), jnp.float32)
    pbuf = pbuf.at[r_w1:r_w1 + d_in, 0:fw].set(params["w1"])
    pbuf = pbuf.at[r_w2:r_w2 + fw, 0:h].set(params["w2"])
    # fused head-1 weights: [wa1 | wc1]
    pbuf = pbuf.at[r_wh1:r_wh1 + h, 0:h].set(params["wa1"])
    pbuf = pbuf.at[r_wh1:r_wh1 + h, h:hw].set(params["wc1"])
    # block-diagonal head-2 weights: [[wa2, 0], [0, wc2]]
    pbuf = pbuf.at[r_wh2:r_wh2 + h, 0:n_actions].set(params["wa2"])
    pbuf = pbuf.at[r_wh2 + h:r_wh2 + hw, n_actions:av].set(params["wc2"])
    # biases (each on its own 8-aligned row)
    pbuf = pbuf.at[r_b:r_b + 1, 0:fw].set(params["b1"])
    pbuf = pbuf.at[r_b + 8:r_b + 9, 0:h].set(params["b2"])
    pbuf = pbuf.at[r_b + 16:r_b + 17, 0:h].set(params["ba1"])
    pbuf = pbuf.at[r_b + 16:r_b + 17, h:hw].set(params["bc1"])
    pbuf = pbuf.at[r_b + 24:r_b + 25, 0:n_actions].set(params["ba2"])
    pbuf = pbuf.at[r_b + 24:r_b + 25, n_actions:av].set(params["bc2"])

    # ---- flatten obs: (B, jobs, feats) -> (B, jobs*feats), matching torch reshape ----
    if real_obs.ndim == 2:
        flat = real_obs.reshape(1, -1)
    else:
        flat = real_obs.reshape(real_obs.shape[0], -1)
    flat = flat.astype(jnp.float32)
    b = flat.shape[0]

    # Batch tiling: single step for tiny batches, 256-row tiles for large ones.
    tile_b = min(256, _round_up(b, 8))
    b_pad = _round_up(b, tile_b)
    if b_pad != b:
        flat = jnp.pad(flat, ((0, b_pad - b), (0, 0)))

    kernel = functools.partial(
        _ppo_fused_kernel,
        d_in=d_in, h=h, fw=fw, hw=hw, out_w=out_w, n_actions=n_actions,
        r_w1=r_w1, r_w2=r_w2, r_wh1=r_wh1, r_wh2=r_wh2, r_b=r_b,
    )

    out = pl.pallas_call(
        kernel,
        out_shape=jax.ShapeDtypeStruct((b_pad, out_w), jnp.float32),
        grid=(b_pad // tile_b,),
        in_specs=[
            pl.BlockSpec((tile_b, d_in), lambda i: (i, 0)),     # obs tile, pipelined
            pl.BlockSpec((p_rows, lane), lambda i: (0, 0)),     # packed params, resident
        ],
        out_specs=pl.BlockSpec((tile_b, out_w), lambda i: (i, 0)),
        compiler_params=pltpu.CompilerParams(
            dimension_semantics=("parallel",)),                 # shards batch across TCs on v7x
    )(flat, pbuf)

    logits = out[:b, :n_actions]
    value = out[:b, n_actions:av]
    return logits, action_mask, value


def _reference_forward(real_obs, action_mask, params):
    flat = real_obs.reshape(real_obs.shape[0], -1).astype(jnp.float32)
    h1 = jnp.maximum(flat @ params["w1"] + params["b1"], 0.0)
    feat = jnp.maximum(h1 @ params["w2"] + params["b2"], 0.0)
    a1 = jnp.maximum(feat @ params["wa1"] + params["ba1"], 0.0)
    logits = a1 @ params["wa2"] + params["ba2"]
    c1 = jnp.maximum(feat @ params["wc1"] + params["bc1"], 0.0)
    value = c1 @ params["wc2"] + params["bc2"]
    return logits, action_mask, value


if __name__ == "__main__":
    # Small shapes consistent with the JSS obs space:
    #   real_obs: (batch, jobs, features_per_job), action_mask: (batch, n_actions)
    batch, jobs, feats_per_job = 2, 8, 4
    hidden_dim = 32
    n_actions = jobs
    input_dim = jobs * feats_per_job

    key = jax.random.PRNGKey(0)
    k_obs, k_mask, k_params = jax.random.split(key, 3)

    real_obs = jax.random.uniform(k_obs, (batch, jobs, feats_per_job), jnp.float32)
    action_mask = (
        jax.random.uniform(k_mask, (batch, n_actions)) > 0.3
    ).astype(jnp.float32)

    params = init_params(k_params, input_dim, hidden_dim, n_actions)

    logits, mask_out, value = ppo_policy_forward(real_obs, action_mask, params)
    jax.block_until_ready((logits, mask_out, value))

    # Correctness check against a plain-JAX reference of the PyTorch forward.
    ref_logits, ref_mask, ref_value = _reference_forward(real_obs, action_mask, params)
    assert logits.shape == (batch, n_actions)
    assert value.shape == (batch, 1)
    assert jnp.allclose(logits, ref_logits, atol=1e-5, rtol=1e-5)
    assert jnp.allclose(value, ref_value, atol=1e-5, rtol=1e-5)
    assert jnp.array_equal(mask_out, action_mask)

    print("KERNEL_OK")
</pallas_src>

<mosaic_0001>
module attributes {stable_mosaic.version = 11 : i64} {
  func.func @_ppo_fused_kernel(%arg0: i32, %arg1: memref<8x32xf32, #tpu.memory_space<vmem>>, %arg2: memref<224x128xf32, #tpu.memory_space<vmem>>, %arg3: memref<8x128xf32, #tpu.memory_space<vmem>>) attributes {dimension_semantics = [#tpu.dimension_semantics<parallel>], iteration_bounds = array<i64: 1>, scalar_prefetch = 0 : i64, scratch_operands = 0 : i64, tpu.core_type = #tpu.core_type<tc>, window_params = [{transform_indices = @transform_0, window_bounds = array<i64: 8, 32>}, {pipeline_mode = #tpu.pipeline_mode<synchronous>, transform_indices = @transform_1, window_bounds = array<i64: 224, 128>}, {transform_indices = @transform_2, window_bounds = array<i64: 8, 128>}]} {
    %c0 = arith.constant 0 : index
    %c0_0 = arith.constant 0 : index
    %0 = vector.load %arg1[%c0, %c0_0] : memref<8x32xf32, #tpu.memory_space<vmem>>, vector<8x32xf32>
    %c0_1 = arith.constant 0 : index
    %c0_2 = arith.constant 0 : index
    %1 = vector.load %arg2[%c0_1, %c0_2] : memref<224x128xf32, #tpu.memory_space<vmem>>, vector<32x64xf32>
    %c192 = arith.constant 192 : index
    %c0_3 = arith.constant 0 : index
    %2 = vector.load %arg2[%c192, %c0_3] : memref<224x128xf32, #tpu.memory_space<vmem>>, vector<1x64xf32>
    %cst = arith.constant dense<0.000000e+00> : vector<8x64xf32>
    %3 = tpu.matmul %0, %1, %cst {dimension_numbers = #tpu.dot_dimension_numbers<[1], [0], [0], [1], [0, 0, 1, 1], [], []>} : vector<8x32xf32>, vector<32x64xf32>, vector<8x64xf32> -> vector<8x64xf32>
    %4 = vector.broadcast %2 : vector<1x64xf32> to vector<8x64xf32>
    %5 = arith.addf %3, %4 : vector<8x64xf32>
    %cst_4 = arith.constant 0.000000e+00 : f32
    %6 = vector.broadcast %cst_4 : f32 to vector<8x64xf32>
    %7 = arith.maximumf %5, %6 : vector<8x64xf32>
    %c32 = arith.constant 32 : index
    %c0_5 = arith.constant 0 : index
    %8 = vector.load %arg2[%c32, %c0_5] : memref<224x128xf32, #tpu.memory_space<vmem>>, vector<64x32xf32>
    %c200 = arith.constant 200 : index
    %c0_6 = arith.constant 0 : index
    %9 = vector.load %arg2[%c200, %c0_6] : memref<224x128xf32, #tpu.memory_space<vmem>>, vector<1x32xf32>
    %cst_7 = arith.constant dense<0.000000e+00> : vector<8x32xf32>
    %10 = tpu.matmul %7, %8, %cst_7 {dimension_numbers = #tpu.dot_dimension_numbers<[1], [0], [0], [1], [0, 0, 1, 1], [], []>} : vector<8x64xf32>, vector<64x32xf32>, vector<8x32xf32> -> vector<8x32xf32>
    %11 = vector.broadcast %9 : vector<1x32xf32> to vector<8x32xf32>
    %12 = arith.addf %10, %11 : vector<8x32xf32>
    %cst_8 = arith.constant 0.000000e+00 : f32
    %13 = vector.broadcast %cst_8 : f32 to vector<8x32xf32>
    %14 = arith.maximumf %12, %13 : vector<8x32xf32>
    %c96 = arith.constant 96 : index
    %c0_9 = arith.constant 0 : index
    %15 = vector.load %arg2[%c96, %c0_9] : memref<224x128xf32, #tpu.memory_space<vmem>>, vector<32x64xf32>
    %c208 = arith.constant 208 : index
    %c0_10 = arith.constant 0 : index
    %16 = vector.load %arg2[%c208, %c0_10] : memref<224x128xf32, #tpu.memory_space<vmem>>, vector<1x64xf32>
    %cst_11 = arith.constant dense<0.000000e+00> : vector<8x64xf32>
    %17 = tpu.matmul %14, %15, %cst_11 {dimension_numbers = #tpu.dot_dimension_numbers<[1], [0], [0], [1], [0, 0, 1, 1], [], []>} : vector<8x32xf32>, vector<32x64xf32>, vector<8x64xf32> -> vector<8x64xf32>
    %18 = vector.broadcast %16 : vector<1x64xf32> to vector<8x64xf32>
    %19 = arith.addf %17, %18 : vector<8x64xf32>
    %cst_12 = arith.constant 0.000000e+00 : f32
    %20 = vector.broadcast %cst_12 : f32 to vector<8x64xf32>
    %21 = arith.maximumf %19, %20 : vector<8x64xf32>
    %c128 = arith.constant 128 : index
    %c0_13 = arith.constant 0 : index
    %22 = vector.load %arg2[%c128, %c0_13] : memref<224x128xf32, #tpu.memory_space<vmem>>, vector<64x128xf32>
    %c216 = arith.constant 216 : index
    %c0_14 = arith.constant 0 : index
    %23 = vector.load %arg2[%c216, %c0_14] : memref<224x128xf32, #tpu.memory_space<vmem>>, vector<1x128xf32>
    %cst_15 = arith.constant dense<0.000000e+00> : vector<8x128xf32>
    %24 = tpu.matmul %21, %22, %cst_15 {dimension_numbers = #tpu.dot_dimension_numbers<[1], [0], [0], [1], [0, 0, 1, 1], [], []>} : vector<8x64xf32>, vector<64x128xf32>, vector<8x128xf32> -> vector<8x128xf32>
    %25 = vector.broadcast %23 : vector<1x128xf32> to vector<8x128xf32>
    %26 = arith.addf %24, %25 : vector<8x128xf32>
    %c0_16 = arith.constant 0 : index
    %c0_17 = arith.constant 0 : index
    %27 = vector.load %arg3[%c0_16, %c0_17] : memref<8x128xf32, #tpu.memory_space<vmem>>, vector<8x128xf32>
    tpu.vector_store %arg3[%c0_16, %c0_17], %26 {strides = array<i32>} : memref<8x128xf32, #tpu.memory_space<vmem>>, vector<8x128xf32>,
    return
  }
  func.func @transform_0(%arg0: i32) -> (i32, i32) {
    %c0_i32 = arith.constant 0 : i32
    %c0_i32_0 = arith.constant 0 : i32
    return %arg0, %c0_i32 : i32, i32
  }
  func.func @transform_1(%arg0: i32) -> (i32, i32) {
    %c0_i32 = arith.constant 0 : i32
    %c0_i32_0 = arith.constant 0 : i32
    %c0_i32_1 = arith.constant 0 : i32
    return %c0_i32, %c0_i32_0 : i32, i32
  }
  func.func @transform_2(%arg0: i32) -> (i32, i32) {
    %c0_i32 = arith.constant 0 : i32
    %c0_i32_0 = arith.constant 0 : i32
    return %arg0, %c0_i32 : i32, i32
  }
}

</mosaic_0001>

<bundles_post_ra>
// kernel: ppo_policy_forward.1
= control target key start
LH: loop header
LB: loop body
LE: loop exit
PB: predicated region body
PF: predicated region fallthrough
CT: control target
= control target key end

     0   :  { %v493_v0 = vmov 0.0|0.0   ;;  %vm494_vm0 = vmmov 0   ;;  %v495_v4 = vmov 0.0   ;;  %vm21_vm1 = vcmask 261120   ;;  %s625_s1 = inlined_call_operand.vmem [shape: f32[224,128], index: 1, kind: input, shape index: {}]   ;;  %s626_s0 = inlined_call_operand.vmem [shape: f32[8,32], index: 0, kind: input, shape index: {}]   ;;  %s627_s2 = inlined_call_operand.vmem [shape: f32[8,128], index: 2, kind: output, shape index: {}]  }
   0x1   :  { %454 = vmatprep.subr.bf16.mxu1 %v493_v0  ;;  %v12_v1 = vld [vmem:[%s625_s1] sm:$0xff]  ;;  %v13_v2 = vld [vmem:[%s625_s1 + $0x8] sm:$0xff]  ;;  %v14_v3 = vld [vmem:[%s625_s1 + $0x10] sm:$0xff]  ;;  %402 = vmatprep.mubr.msk.f32.mxu1 %vm494_vm0, %v495_v4  ;;  %vm109_vm2 = vcmask 523264  }
   0x2   :  { %v455_v5 = vpack.c.bf16 %v13_v2, %v12_v1  ;;  %v15_v6 = vld [vmem:[%s625_s1 + $0x18] sm:$0xff]  ;;  %472 = vmatprep.subr.bf16.mxu0 %v493_v0  ;;  %432 = vmatprep.mubr.msk.f32.mxu0 %vm494_vm0, %v495_v4  ;;  %v96_v8 = vld [vmem:[%s625_s1 + $0x20] sm:$0xff]  ;;  %v97_v9 = vld [vmem:[%s625_s1 + $0x28] sm:$0xff] }
   0x3   :  { %v458_v7 = vpack.c.bf16 %v15_v6, %v14_v3  ;;  %v11_v10 = vld [vmem:[%s626_s0] sm:$0xff]  ;;  %v461_v11 = vpack.c.bf16 %v97_v9, %v96_v8  ;;  %v98_v12 = vld [vmem:[%s625_s1 + $0x30] sm:$0xff]  ;;  %v99_v13 = vld [vmem:[%s625_s1 + $0x38] sm:$0xff] }
   0x4   :  { %456 = vmatpush3.bf16.msra.mxu1 %v455_v5  ;;  %v464_v14 = vpack.c.bf16 %v99_v13, %v98_v12  ;;  %v100_v15 = vld [vmem:[%s625_s1 + $0x40] sm:$0xff]  ;;  %v101_v16 = vld [vmem:[%s625_s1 + $0x48] sm:$0xff]  ;;  %v102_v18 = vld [vmem:[%s625_s1 + $0x50] sm:$0xff] }
   0x5   :  { %457 = vmatprep.subr.bf16.mxu1 %v493_v0  ;;  %v467_v17 = vpack.c.bf16 %v101_v16, %v100_v15  ;;  %v103_v19 = vld [vmem:[%s625_s1 + $0x58] sm:$0xff]  ;;  %v184_v21 = vld [vmem:[%s625_s1 + $0x60] sm:$0xff]  ;;  %v185_v22 = vld [vmem:[%s625_s1 + $0x68] sm:$0xff] }
   0x6   :  { %v470_v20 = vpack.c.bf16 %v103_v19, %v102_v18  ;;  %v473_v23 = vpack.c.bf16 %v185_v22, %v184_v21  ;;  %v358_v24 = vld [vmem:[%s625_s1 + $0xc0] ss:$0 sm:$0xff]  ;;  %v186_v29 = vld [vmem:[%s625_s1 + $0x70] sm:$0xff]  ;;  %v187_v30 = vld [vmem:[%s625_s1 + $0x78] sm:$0xff] }
   0x7   :  { %v476_v31 = vpack.c.bf16 %v187_v30, %v186_v29  ;;  %v360_v32 = vld [vmem:[%s625_s1 + $0xc8] ss:$0 sm:$0xff]  ;;  %v267_v33 = vld [vmem:[%s625_s1 + $0x80] sm:$0xff]  ;;  %v269_v40 = vld [vmem:[%s625_s1 + $0x90] sm:$0xff] }
   0x8   :  { %459 = vmatpush3.bf16.msra.mxu1 %v458_v7  ;;  %474 = vmatpush3.bf16.msra.mxu0 %v473_v23  ;;  %v268_v34 = vld [vmem:[%s625_s1 + $0x88] sm:$0xff]  ;;  %v270_v41 = vld [vmem:[%s625_s1 + $0x98] sm:$0xff]  ;;  %v271_v43 = vld [vmem:[%s625_s1 + $0xa0] sm:$0xff] }
   0x9   :  { %460 = vmatprep.subr.bf16.mxu1 %v493_v0  ;;  %475 = vmatprep.subr.bf16.mxu0 %v493_v0  ;;  %v479_v38 = vpack.c.bf16 %v268_v34, %v267_v33  ;;  %v482_v42 = vpack.c.bf16 %v270_v41, %v269_v40  ;;  %v272_v44 = vld [vmem:[%s625_s1 + $0xa8] sm:$0xff]  ;;  %v273_v46 = vld [vmem:[%s625_s1 + $0xb0] sm:$0xff]  ;;  %v274_v47 = vld [vmem:[%s625_s1 + $0xb8] sm:$0xff] }
   0xa   :  { %v485_v45 = vpack.c.bf16 %v272_v44, %v271_v43  ;;  %v488_v48 = vpack.c.bf16 %v274_v47, %v273_v46  ;;  %v362_v49 = vld [vmem:[%s625_s1 + $0xd0] ss:$0 sm:$0xff]  ;;  %v364_v54 = vld [vmem:[%s625_s1 + $0xd8] ss:$0 sm:$0xff] }
   0xb   :  { %403 = vmatmul.mubr.msk.f32.vlgmr.msra.gmra.mrb[0].mxu1 %vm21_vm1, %v11_v10 }
   0xc   :  { %462 = vmatpush3.bf16.msra.mxu1 %v461_v11  ;;  %421 = vmatprep.mubr.msk.f32.mxu1 %vm494_vm0, %v495_v4 }
   0xd   :  { %463 = vmatprep.subr.bf16.mxu1 %v493_v0  ;;  %477 = vmatpush3.bf16.msra.mxu0 %v476_v31 }
   0xe   :  { %478 = vmatprep.subr.bf16.mxu0 %v493_v0 }
  0x10   :  { %465 = vmatpush3.bf16.msra.mxu1 %v464_v14 }
  0x11   :  { %466 = vmatprep.subr.bf16.mxu1 %v493_v0 }
  0x14   :  { %468 = vmatpush3.bf16.msra.mxu1 %v467_v17 }
  0x15   :  { %469 = vmatprep.subr.bf16.mxu1 %v493_v0 }
  0x18   :  { %471 = vmatpush3.bf16.msra.mxu1 %v470_v20 }
  0xde   :  { %v91_v25 = vpop.f32.mrb[0].mxu1 }
  0xdf   :  { %v92_v26 = vadd.f32 %v358_v24, %v91_v25  ;;  %v404_v27 = vpop.f32.mrb[1].mxu1 }
  0xe1   :  { %v95_v28 = vmax.f32 %v92_v26, 0.0 }
  0xe3   :  { %422 = vmatmul.mubr.msk.f32.vlgmr.msra.gmra.mrb[2].mxu1 %vm109_vm2, %v95_v28 }
 0x1b6   :  { %v179_v35 = vpop.f32.mrb[2].mxu1 }
 0x1b7   :  { %v180_v36 = vadd.f32 %v360_v32, %v179_v35  ;;  %v423_v37 = vpop.f32.mrb[3].mxu1 }
 0x1b9   :  { %v183_v39 = vmax.f32 %v180_v36, 0.0 }
 0x1bb   :  { %433 = vmatmul.mubr.msk.f32.vlgmr.msra.gmra.mrb[0].mxu0 %vm21_vm1, %v183_v39 }
 0x1bc   :  { %480 = vmatpush3.bf16.msra.mxu0 %v479_v38  ;;  %451 = vmatprep.mubr.msk.f32.mxu0 %vm494_vm0, %v495_v4 }
 0x1bd   :  { %481 = vmatprep.subr.bf16.mxu0 %v493_v0 }
 0x1c0   :  { %483 = vmatpush3.bf16.msra.mxu0 %v482_v42 }
 0x1c1   :  { %484 = vmatprep.subr.bf16.mxu0 %v493_v0 }
 0x1c4   :  { %486 = vmatpush3.bf16.msra.mxu0 %v485_v45 }
 0x1c5   :  { %487 = vmatprep.subr.bf16.mxu0 %v493_v0 }
 0x1c8   :  { %489 = vmatpush3.bf16.msra.mxu0 %v488_v48 }
 0x28e   :  { %v262_v50 = vpop.f32.mrb[0].mxu0 }
 0x28f   :  { %v263_v51 = vadd.f32 %v362_v49, %v262_v50  ;;  %v434_v52 = vpop.f32.mrb[1].mxu0 }
 0x291   :  { %v266_v53 = vmax.f32 %v263_v51, 0.0 }
 0x293   :  { %452 = vmatmul.mubr.msk.f32.vlgmr.msra.gmra.mrb[2].mxu0 %vm109_vm2, %v266_v53 }
 0x366   :  { %v349_v55 = vpop.f32.mrb[2].mxu0 }
 0x367   :  { %v350_v56 = vadd.f32 %v364_v54, %v349_v55  ;;  %v453_v57 = vpop.f32.mrb[3].mxu0 }
 0x369   :  { %353 = vst [vmem:[%s627_s2] sm:$0xff] %v350_v56 }

</bundles_post_ra>
